<compile_context>
chip_gen: v7x
topology: tpu7x:2x2x1
jax: 0.10.0
libtpu: 0.0.40
codegen_flags: <defaults>
</compile_context>

<pallas_src>
import functools

import jax
import jax.numpy as jnp
from jax import lax
from jax.experimental import pallas as pl
from jax.experimental.pallas import tpu as pltpu

INPUT_DIM = 4
HIDDEN_DIMS = [512, 256, 128]
HEAD_DIM = 64
K_PAD = 16             # layer-1 K dim padded for a clean bf16 MXU pass
HEAD_PAD = 128         # head hidden dim padded to full lane width
OUT_PAD = 128          # lane-dense padded width of the final output
LN_EPS = 1e-5


def _round_up(x, m):
    return ((x + m - 1) // m) * m


def _choose_tile(batch, tile_b):
    """Batch tile: multiple of 16, capped at tile_b, >=2 grid steps when big."""
    tb = _round_up(min(tile_b, _round_up(batch, 16)), 16)
    # Prefer >=2 grid steps so a 2-TensorCore chip (v7x) can shard the batch.
    if batch > 256 and _round_up(batch, tb) // tb < 2:
        tb = _round_up((batch + 1) // 2, 16)
    return tb


def _linear(h_bf16, w_ref, b_ref):
    """bf16 MXU matmul (weights pre-cast in the wrapper), f32 accumulate."""
    return jnp.dot(h_bf16, w_ref[...], preferred_element_type=jnp.float32) + b_ref[...]


def _layernorm_relu(h, g_ref, b_ref):
    """One-pass LayerNorm (var = E[x^2] - mu^2, all f32) fused with ReLU."""
    inv_n = 1.0 / h.shape[-1]
    mu = jnp.sum(h, axis=-1, keepdims=True) * inv_n
    ex2 = jnp.sum(h * h, axis=-1, keepdims=True) * inv_n
    var = jnp.maximum(ex2 - mu * mu, 0.0)          # guard tiny negative values
    y = (h - mu) * lax.rsqrt(var + LN_EPS) * g_ref[...] + b_ref[...]
    return jnp.maximum(y, 0.0)


def mlp_kernel(x_ref,
               w1_ref, b1_ref, g1_ref, be1_ref,
               w2_ref, b2_ref, g2_ref, be2_ref,
               w3_ref, b3_ref, g3_ref, be3_ref,
               w4_ref, b4_ref,
               w5_ref, b5_ref,
               o_ref):
    # --- Block 1: Linear(4->512) on the MXU (x/w1 zero-padded to K=16 bf16) ---
    h = _linear(x_ref[...], w1_ref, b1_ref)               # (TB, 512) f32
    h = _layernorm_relu(h, g1_ref, be1_ref)

    # --- Block 2: Linear(512,256) + LayerNorm + ReLU ---
    h = _linear(h.astype(jnp.bfloat16), w2_ref, b2_ref)
    h = _layernorm_relu(h, g2_ref, be2_ref)

    # --- Block 3: Linear(256,128) + LayerNorm + ReLU ---
    h = _linear(h.astype(jnp.bfloat16), w3_ref, b3_ref)
    h = _layernorm_relu(h, g3_ref, be3_ref)

    # --- Head: Linear(128,64 padded to 128) + ReLU + Linear(64,1 padded) ---
    h = jnp.maximum(_linear(h.astype(jnp.bfloat16), w4_ref, b4_ref), 0.0)
    h = _linear(h.astype(jnp.bfloat16), w5_ref, b5_ref)    # (TB, 128), col 0 real

    o_ref[...] = h.astype(o_ref.dtype)                     # bf16 lane-dense store


def init_params(key):
    """Deterministic synthetic parameters (PyTorch layer shapes, W transposed)."""
    dims = [INPUT_DIM] + HIDDEN_DIMS + [HEAD_DIM, 1]
    params = []
    k = key
    # Three Linear + LayerNorm blocks.
    for i in range(3):
        k, kw, kb = jax.random.split(k, 3)
        d_in, d_out = dims[i], dims[i + 1]
        w = jax.random.normal(kw, (d_in, d_out), jnp.float32) * (1.0 / jnp.sqrt(d_in))
        b = jax.random.normal(kb, (1, d_out), jnp.float32) * 0.02
        gamma = jnp.ones((1, d_out), jnp.float32)
        beta = jnp.zeros((1, d_out), jnp.float32)
        params.extend([w, b, gamma, beta])
    # Head linears (128->64, 64->1), no layernorm.
    for i in range(3, 5):
        k, kw, kb = jax.random.split(k, 3)
        d_in, d_out = dims[i], dims[i + 1]
        w = jax.random.normal(kw, (d_in, d_out), jnp.float32) * (1.0 / jnp.sqrt(d_in))
        b = jax.random.normal(kb, (1, d_out), jnp.float32) * 0.02
        params.extend([w, b])
    return params


@functools.partial(jax.jit, static_argnames=("tile_b",))
def nkat_forward(x, params, tile_b=1024):
    B = x.shape[0]
    tb = _choose_tile(B, tile_b)
    B_pad = _round_up(B, tb)

    # Pad + pre-cast the input: (B, 4) f32 -> (B_pad, 16) bf16.
    x_p = jnp.pad(x.astype(jnp.bfloat16), ((0, B_pad - B), (0, K_PAD - INPUT_DIM)))

    (w1, b1, g1, be1, w2, b2, g2, be2, w3, b3, g3, be3, w4, b4, w5, b5) = params
    # Pre-cast matmul weights to bf16; pad layer-1 K and head N dims to
    # lane-friendly sizes.  Biases / LayerNorm params stay f32.
    w1p = jnp.pad(w1, ((0, K_PAD - w1.shape[0]), (0, 0))).astype(jnp.bfloat16)
    w2c = w2.astype(jnp.bfloat16)
    w3c = w3.astype(jnp.bfloat16)
    w4p = jnp.pad(w4, ((0, 0), (0, HEAD_PAD - w4.shape[1]))).astype(jnp.bfloat16)
    b4p = jnp.pad(b4, ((0, 0), (0, HEAD_PAD - b4.shape[1])))
    w5p = jnp.pad(w5, ((0, HEAD_PAD - w5.shape[0]),
                       (0, OUT_PAD - w5.shape[1]))).astype(jnp.bfloat16)
    b5p = jnp.pad(b5, ((0, 0), (0, OUT_PAD - b5.shape[1])))
    kparams = [w1p, b1, g1, be1, w2c, b2, g2, be2, w3c, b3, g3, be3,
               w4p, b4p, w5p, b5p]

    grid = (B_pad // tb,)
    in_specs = [pl.BlockSpec((tb, K_PAD), lambda i: (i, 0))]
    # Weights/biases: whole-array block, identical for every grid step.
    in_specs += [pl.BlockSpec(p.shape, lambda i: (0, 0)) for p in kparams]
    out_spec = pl.BlockSpec((tb, OUT_PAD), lambda i: (i, 0))

    out = pl.pallas_call(
        mlp_kernel,
        out_shape=jax.ShapeDtypeStruct((B_pad, OUT_PAD), jnp.bfloat16),
        grid_spec=pltpu.PrefetchScalarGridSpec(
            num_scalar_prefetch=0,
            grid=grid,
            in_specs=in_specs,
            out_specs=out_spec,
        ),
        compiler_params=pltpu.CompilerParams(
            dimension_semantics=("parallel",),
            vmem_limit_bytes=32 * 1024 * 1024,
        ),
    )(x_p, *kparams)

    return out[:B, :1].astype(jnp.float32)


def nkat_forward_ref(x, params):
    """Pure-JAX reference: PyTorch-style two-pass f32 LayerNorm, bf16 MXU dots."""
    w1, b1, g1, be1, w2, b2, g2, be2, w3, b3, g3, be3, w4, b4, w5, b5 = params

    def ln(h, g, b):
        mu = jnp.mean(h, axis=-1, keepdims=True)
        var = jnp.mean((h - mu) ** 2, axis=-1, keepdims=True)
        return (h - mu) * lax.rsqrt(var + LN_EPS) * g + b

    def lin(h, w, b):
        return jnp.dot(h.astype(jnp.bfloat16), w.astype(jnp.bfloat16),
                       preferred_element_type=jnp.float32) + b

    x = x.astype(jnp.float32)
    h = jnp.maximum(ln(lin(x, w1, b1), g1, be1), 0.0)
    h = jnp.maximum(ln(lin(h, w2, b2), g2, be2), 0.0)
    h = jnp.maximum(ln(lin(h, w3, b3), g3, be3), 0.0)
    h = jnp.maximum(lin(h, w4, b4), 0.0)
    return lin(h, w5, b5)


if __name__ == "__main__":
    key = jax.random.PRNGKey(0)
    kx, kp = jax.random.split(key)

    B = 16  # small demo batch (wrapper handles padding / tile clamping)
    x = jax.random.normal(kx, (B, INPUT_DIM), jnp.float32)
    params = init_params(kp)

    out = jax.block_until_ready(nkat_forward(x, params))
    ref = nkat_forward_ref(x, params)

    assert out.shape == (B, 1), out.shape
    assert bool(jnp.all(jnp.isfinite(out)))
    # Tolerance covers bf16 matmul inputs, one-pass LN, and the bf16 output cast.
    max_err = float(jnp.max(jnp.abs(out - ref)))
    assert max_err < 2e-2, max_err
    print("KERNEL_OK")
</pallas_src>

<mosaic_0001>
module attributes {stable_mosaic.version = 11 : i64} {
  func.func @mlp_kernel(%arg0: i32, %arg1: memref<16x16xbf16, #tpu.memory_space<vmem>>, %arg2: memref<16x512xbf16, #tpu.memory_space<vmem>>, %arg3: memref<1x512xf32, #tpu.memory_space<vmem>>, %arg4: memref<1x512xf32, #tpu.memory_space<vmem>>, %arg5: memref<1x512xf32, #tpu.memory_space<vmem>>, %arg6: memref<512x256xbf16, #tpu.memory_space<vmem>>, %arg7: memref<1x256xf32, #tpu.memory_space<vmem>>, %arg8: memref<1x256xf32, #tpu.memory_space<vmem>>, %arg9: memref<1x256xf32, #tpu.memory_space<vmem>>, %arg10: memref<256x128xbf16, #tpu.memory_space<vmem>>, %arg11: memref<1x128xf32, #tpu.memory_space<vmem>>, %arg12: memref<1x128xf32, #tpu.memory_space<vmem>>, %arg13: memref<1x128xf32, #tpu.memory_space<vmem>>, %arg14: memref<128x128xbf16, #tpu.memory_space<vmem>>, %arg15: memref<1x128xf32, #tpu.memory_space<vmem>>, %arg16: memref<128x128xbf16, #tpu.memory_space<vmem>>, %arg17: memref<1x128xf32, #tpu.memory_space<vmem>>, %arg18: memref<16x128xbf16, #tpu.memory_space<vmem>>) attributes {dimension_semantics = [#tpu.dimension_semantics<parallel>], iteration_bounds = array<i64: 1>, scalar_prefetch = 0 : i64, scratch_operands = 0 : i64, tpu.core_type = #tpu.core_type<tc>, window_params = [{transform_indices = @transform_0, window_bounds = array<i64: 16, 16>}, {pipeline_mode = #tpu.pipeline_mode<synchronous>, transform_indices = @transform_1, window_bounds = array<i64: 16, 512>}, {pipeline_mode = #tpu.pipeline_mode<synchronous>, transform_indices = @transform_2, window_bounds = array<i64: 1, 512>}, {pipeline_mode = #tpu.pipeline_mode<synchronous>, transform_indices = @transform_3, window_bounds = array<i64: 1, 512>}, {pipeline_mode = #tpu.pipeline_mode<synchronous>, transform_indices = @transform_4, window_bounds = array<i64: 1, 512>}, {pipeline_mode = #tpu.pipeline_mode<synchronous>, transform_indices = @transform_5, window_bounds = array<i64: 512, 256>}, {pipeline_mode = #tpu.pipeline_mode<synchronous>, transform_indices = @transform_6, window_bounds = array<i64: 1, 256>}, {pipeline_mode = #tpu.pipeline_mode<synchronous>, transform_indices = @transform_7, window_bounds = array<i64: 1, 256>}, {pipeline_mode = #tpu.pipeline_mode<synchronous>, transform_indices = @transform_8, window_bounds = array<i64: 1, 256>}, {pipeline_mode = #tpu.pipeline_mode<synchronous>, transform_indices = @transform_9, window_bounds = array<i64: 256, 128>}, {pipeline_mode = #tpu.pipeline_mode<synchronous>, transform_indices = @transform_10, window_bounds = array<i64: 1, 128>}, {pipeline_mode = #tpu.pipeline_mode<synchronous>, transform_indices = @transform_11, window_bounds = array<i64: 1, 128>}, {pipeline_mode = #tpu.pipeline_mode<synchronous>, transform_indices = @transform_12, window_bounds = array<i64: 1, 128>}, {pipeline_mode = #tpu.pipeline_mode<synchronous>, transform_indices = @transform_13, window_bounds = array<i64: 128, 128>}, {pipeline_mode = #tpu.pipeline_mode<synchronous>, transform_indices = @transform_14, window_bounds = array<i64: 1, 128>}, {pipeline_mode = #tpu.pipeline_mode<synchronous>, transform_indices = @transform_15, window_bounds = array<i64: 128, 128>}, {pipeline_mode = #tpu.pipeline_mode<synchronous>, transform_indices = @transform_16, window_bounds = array<i64: 1, 128>}, {transform_indices = @transform_17, window_bounds = array<i64: 16, 128>}]} {
    %c0 = arith.constant 0 : index
    %c0_0 = arith.constant 0 : index
    %0 = vector.load %arg1[%c0, %c0_0] : memref<16x16xbf16, #tpu.memory_space<vmem>>, vector<16x16xbf16>
    %c0_1 = arith.constant 0 : index
    %c0_2 = arith.constant 0 : index
    %1 = vector.load %arg2[%c0_1, %c0_2] : memref<16x512xbf16, #tpu.memory_space<vmem>>, vector<16x512xbf16>
    %cst = arith.constant dense<0.000000e+00> : vector<16x512xf32>
    %2 = tpu.matmul %0, %1, %cst {dimension_numbers = #tpu.dot_dimension_numbers<[1], [0], [0], [1], [0, 0, 1, 1], [], []>} : vector<16x16xbf16>, vector<16x512xbf16>, vector<16x512xf32> -> vector<16x512xf32>
    %c0_3 = arith.constant 0 : index
    %c0_4 = arith.constant 0 : index
    %3 = vector.load %arg3[%c0_3, %c0_4] : memref<1x512xf32, #tpu.memory_space<vmem>>, vector<1x512xf32>
    %4 = vector.broadcast %3 : vector<1x512xf32> to vector<16x512xf32>
    %5 = arith.addf %2, %4 : vector<16x512xf32>
    %cst_5 = arith.constant dense<0.000000e+00> : vector<16xf32>
    %6 = vector.multi_reduction <add>, %5, %cst_5 [1] : vector<16x512xf32> to vector<16xf32>
    %7 = vector.shape_cast %6 : vector<16xf32> to vector<16x1xf32>
    %cst_6 = arith.constant 0.001953125 : f32
    %8 = vector.broadcast %cst_6 : f32 to vector<16x1xf32>
    %9 = arith.mulf %7, %8 : vector<16x1xf32>
    %10 = arith.mulf %5, %5 : vector<16x512xf32>
    %cst_7 = arith.constant dense<0.000000e+00> : vector<16xf32>
    %11 = vector.multi_reduction <add>, %10, %cst_7 [1] : vector<16x512xf32> to vector<16xf32>
    %12 = vector.shape_cast %11 : vector<16xf32> to vector<16x1xf32>
    %cst_8 = arith.constant 0.001953125 : f32
    %13 = vector.broadcast %cst_8 : f32 to vector<16x1xf32>
    %14 = arith.mulf %12, %13 : vector<16x1xf32>
    %15 = arith.mulf %9, %9 : vector<16x1xf32>
    %16 = arith.subf %14, %15 : vector<16x1xf32>
    %cst_9 = arith.constant 0.000000e+00 : f32
    %17 = vector.broadcast %cst_9 : f32 to vector<16x1xf32>
    %18 = arith.maximumf %16, %17 : vector<16x1xf32>
    %19 = vector.broadcast %9 : vector<16x1xf32> to vector<16x512xf32>
    %20 = arith.subf %5, %19 : vector<16x512xf32>
    %cst_10 = arith.constant 9.99999974E-6 : f32
    %21 = vector.broadcast %cst_10 : f32 to vector<16x1xf32>
    %22 = arith.addf %18, %21 : vector<16x1xf32>
    %23 = math.rsqrt %22 : vector<16x1xf32>
    %24 = vector.broadcast %23 : vector<16x1xf32> to vector<16x512xf32>
    %25 = arith.mulf %20, %24 : vector<16x512xf32>
    %c0_11 = arith.constant 0 : index
    %c0_12 = arith.constant 0 : index
    %26 = vector.load %arg4[%c0_11, %c0_12] : memref<1x512xf32, #tpu.memory_space<vmem>>, vector<1x512xf32>
    %27 = vector.broadcast %26 : vector<1x512xf32> to vector<16x512xf32>
    %28 = arith.mulf %25, %27 : vector<16x512xf32>
    %c0_13 = arith.constant 0 : index
    %c0_14 = arith.constant 0 : index
    %29 = vector.load %arg5[%c0_13, %c0_14] : memref<1x512xf32, #tpu.memory_space<vmem>>, vector<1x512xf32>
    %30 = vector.broadcast %29 : vector<1x512xf32> to vector<16x512xf32>
    %31 = arith.addf %28, %30 : vector<16x512xf32>
    %cst_15 = arith.constant 0.000000e+00 : f32
    %32 = vector.broadcast %cst_15 : f32 to vector<16x512xf32>
    %33 = arith.maximumf %31, %32 : vector<16x512xf32>
    %34 = arith.truncf %33 : vector<16x512xf32> to vector<16x512xbf16>
    %c0_16 = arith.constant 0 : index
    %c0_17 = arith.constant 0 : index
    %35 = vector.load %arg6[%c0_16, %c0_17] : memref<512x256xbf16, #tpu.memory_space<vmem>>, vector<512x256xbf16>
    %cst_18 = arith.constant dense<0.000000e+00> : vector<16x256xf32>
    %36 = tpu.matmul %34, %35, %cst_18 {dimension_numbers = #tpu.dot_dimension_numbers<[1], [0], [0], [1], [0, 0, 1, 1], [], []>} : vector<16x512xbf16>, vector<512x256xbf16>, vector<16x256xf32> -> vector<16x256xf32>
    %c0_19 = arith.constant 0 : index
    %c0_20 = arith.constant 0 : index
    %37 = vector.load %arg7[%c0_19, %c0_20] : memref<1x256xf32, #tpu.memory_space<vmem>>, vector<1x256xf32>
    %38 = vector.broadcast %37 : vector<1x256xf32> to vector<16x256xf32>
    %39 = arith.addf %36, %38 : vector<16x256xf32>
    %cst_21 = arith.constant dense<0.000000e+00> : vector<16xf32>
    %40 = vector.multi_reduction <add>, %39, %cst_21 [1] : vector<16x256xf32> to vector<16xf32>
    %41 = vector.shape_cast %40 : vector<16xf32> to vector<16x1xf32>
    %cst_22 = arith.constant 3.906250e-03 : f32
    %42 = vector.broadcast %cst_22 : f32 to vector<16x1xf32>
    %43 = arith.mulf %41, %42 : vector<16x1xf32>
    %44 = arith.mulf %39, %39 : vector<16x256xf32>
    %cst_23 = arith.constant dense<0.000000e+00> : vector<16xf32>
    %45 = vector.multi_reduction <add>, %44, %cst_23 [1] : vector<16x256xf32> to vector<16xf32>
    %46 = vector.shape_cast %45 : vector<16xf32> to vector<16x1xf32>
    %cst_24 = arith.constant 3.906250e-03 : f32
    %47 = vector.broadcast %cst_24 : f32 to vector<16x1xf32>
    %48 = arith.mulf %46, %47 : vector<16x1xf32>
    %49 = arith.mulf %43, %43 : vector<16x1xf32>
    %50 = arith.subf %48, %49 : vector<16x1xf32>
    %cst_25 = arith.constant 0.000000e+00 : f32
    %51 = vector.broadcast %cst_25 : f32 to vector<16x1xf32>
    %52 = arith.maximumf %50, %51 : vector<16x1xf32>
    %53 = vector.broadcast %43 : vector<16x1xf32> to vector<16x256xf32>
    %54 = arith.subf %39, %53 : vector<16x256xf32>
    %cst_26 = arith.constant 9.99999974E-6 : f32
    %55 = vector.broadcast %cst_26 : f32 to vector<16x1xf32>
    %56 = arith.addf %52, %55 : vector<16x1xf32>
    %57 = math.rsqrt %56 : vector<16x1xf32>
    %58 = vector.broadcast %57 : vector<16x1xf32> to vector<16x256xf32>
    %59 = arith.mulf %54, %58 : vector<16x256xf32>
    %c0_27 = arith.constant 0 : index
    %c0_28 = arith.constant 0 : index
    %60 = vector.load %arg8[%c0_27, %c0_28] : memref<1x256xf32, #tpu.memory_space<vmem>>, vector<1x256xf32>
    %61 = vector.broadcast %60 : vector<1x256xf32> to vector<16x256xf32>
    %62 = arith.mulf %59, %61 : vector<16x256xf32>
    %c0_29 = arith.constant 0 : index
    %c0_30 = arith.constant 0 : index
    %63 = vector.load %arg9[%c0_29, %c0_30] : memref<1x256xf32, #tpu.memory_space<vmem>>, vector<1x256xf32>
    %64 = vector.broadcast %63 : vector<1x256xf32> to vector<16x256xf32>
    %65 = arith.addf %62, %64 : vector<16x256xf32>
    %cst_31 = arith.constant 0.000000e+00 : f32
    %66 = vector.broadcast %cst_31 : f32 to vector<16x256xf32>
    %67 = arith.maximumf %65, %66 : vector<16x256xf32>
    %68 = arith.truncf %67 : vector<16x256xf32> to vector<16x256xbf16>
    %c0_32 = arith.constant 0 : index
    %c0_33 = arith.constant 0 : index
    %69 = vector.load %arg10[%c0_32, %c0_33] : memref<256x128xbf16, #tpu.memory_space<vmem>>, vector<256x128xbf16>
    %cst_34 = arith.constant dense<0.000000e+00> : vector<16x128xf32>
    %70 = tpu.matmul %68, %69, %cst_34 {dimension_numbers = #tpu.dot_dimension_numbers<[1], [0], [0], [1], [0, 0, 1, 1], [], []>} : vector<16x256xbf16>, vector<256x128xbf16>, vector<16x128xf32> -> vector<16x128xf32>
    %c0_35 = arith.constant 0 : index
    %c0_36 = arith.constant 0 : index
    %71 = vector.load %arg11[%c0_35, %c0_36] : memref<1x128xf32, #tpu.memory_space<vmem>>, vector<1x128xf32>
    %72 = vector.broadcast %71 : vector<1x128xf32> to vector<16x128xf32>
    %73 = arith.addf %70, %72 : vector<16x128xf32>
    %cst_37 = arith.constant dense<0.000000e+00> : vector<16xf32>
    %74 = vector.multi_reduction <add>, %73, %cst_37 [1] : vector<16x128xf32> to vector<16xf32>
    %75 = vector.shape_cast %74 : vector<16xf32> to vector<16x1xf32>
    %cst_38 = arith.constant 7.812500e-03 : f32
    %76 = vector.broadcast %cst_38 : f32 to vector<16x1xf32>
    %77 = arith.mulf %75, %76 : vector<16x1xf32>
    %78 = arith.mulf %73, %73 : vector<16x128xf32>
    %cst_39 = arith.constant dense<0.000000e+00> : vector<16xf32>
    %79 = vector.multi_reduction <add>, %78, %cst_39 [1] : vector<16x128xf32> to vector<16xf32>
    %80 = vector.shape_cast %79 : vector<16xf32> to vector<16x1xf32>
    %cst_40 = arith.constant 7.812500e-03 : f32
    %81 = vector.broadcast %cst_40 : f32 to vector<16x1xf32>
    %82 = arith.mulf %80, %81 : vector<16x1xf32>
    %83 = arith.mulf %77, %77 : vector<16x1xf32>
    %84 = arith.subf %82, %83 : vector<16x1xf32>
    %cst_41 = arith.constant 0.000000e+00 : f32
    %85 = vector.broadcast %cst_41 : f32 to vector<16x1xf32>
    %86 = arith.maximumf %84, %85 : vector<16x1xf32>
    %87 = vector.broadcast %77 : vector<16x1xf32> to vector<16x128xf32>
    %88 = arith.subf %73, %87 : vector<16x128xf32>
    %cst_42 = arith.constant 9.99999974E-6 : f32
    %89 = vector.broadcast %cst_42 : f32 to vector<16x1xf32>
    %90 = arith.addf %86, %89 : vector<16x1xf32>
    %91 = math.rsqrt %90 : vector<16x1xf32>
    %92 = vector.broadcast %91 : vector<16x1xf32> to vector<16x128xf32>
    %93 = arith.mulf %88, %92 : vector<16x128xf32>
    %c0_43 = arith.constant 0 : index
    %c0_44 = arith.constant 0 : index
    %94 = vector.load %arg12[%c0_43, %c0_44] : memref<1x128xf32, #tpu.memory_space<vmem>>, vector<1x128xf32>
    %95 = vector.broadcast %94 : vector<1x128xf32> to vector<16x128xf32>
    %96 = arith.mulf %93, %95 : vector<16x128xf32>
    %c0_45 = arith.constant 0 : index
    %c0_46 = arith.constant 0 : index
    %97 = vector.load %arg13[%c0_45, %c0_46] : memref<1x128xf32, #tpu.memory_space<vmem>>, vector<1x128xf32>
    %98 = vector.broadcast %97 : vector<1x128xf32> to vector<16x128xf32>
    %99 = arith.addf %96, %98 : vector<16x128xf32>
    %cst_47 = arith.constant 0.000000e+00 : f32
    %100 = vector.broadcast %cst_47 : f32 to vector<16x128xf32>
    %101 = arith.maximumf %99, %100 : vector<16x128xf32>
    %102 = arith.truncf %101 : vector<16x128xf32> to vector<16x128xbf16>
    %c0_48 = arith.constant 0 : index
    %c0_49 = arith.constant 0 : index
    %103 = vector.load %arg14[%c0_48, %c0_49] : memref<128x128xbf16, #tpu.memory_space<vmem>>, vector<128x128xbf16>
    %cst_50 = arith.constant dense<0.000000e+00> : vector<16x128xf32>
    %104 = tpu.matmul %102, %103, %cst_50 {dimension_numbers = #tpu.dot_dimension_numbers<[1], [0], [0], [1], [0, 0, 1, 1], [], []>} : vector<16x128xbf16>, vector<128x128xbf16>, vector<16x128xf32> -> vector<16x128xf32>
    %c0_51 = arith.constant 0 : index
    %c0_52 = arith.constant 0 : index
    %105 = vector.load %arg15[%c0_51, %c0_52] : memref<1x128xf32, #tpu.memory_space<vmem>>, vector<1x128xf32>
    %106 = vector.broadcast %105 : vector<1x128xf32> to vector<16x128xf32>
    %107 = arith.addf %104, %106 : vector<16x128xf32>
    %cst_53 = arith.constant 0.000000e+00 : f32
    %108 = vector.broadcast %cst_53 : f32 to vector<16x128xf32>
    %109 = arith.maximumf %107, %108 : vector<16x128xf32>
    %110 = arith.truncf %109 : vector<16x128xf32> to vector<16x128xbf16>
    %c0_54 = arith.constant 0 : index
    %c0_55 = arith.constant 0 : index
    %111 = vector.load %arg16[%c0_54, %c0_55] : memref<128x128xbf16, #tpu.memory_space<vmem>>, vector<128x128xbf16>
    %cst_56 = arith.constant dense<0.000000e+00> : vector<16x128xf32>
    %112 = tpu.matmul %110, %111, %cst_56 {dimension_numbers = #tpu.dot_dimension_numbers<[1], [0], [0], [1], [0, 0, 1, 1], [], []>} : vector<16x128xbf16>, vector<128x128xbf16>, vector<16x128xf32> -> vector<16x128xf32>
    %c0_57 = arith.constant 0 : index
    %c0_58 = arith.constant 0 : index
    %113 = vector.load %arg17[%c0_57, %c0_58] : memref<1x128xf32, #tpu.memory_space<vmem>>, vector<1x128xf32>
    %114 = vector.broadcast %113 : vector<1x128xf32> to vector<16x128xf32>
    %115 = arith.addf %112, %114 : vector<16x128xf32>
    %116 = arith.truncf %115 : vector<16x128xf32> to vector<16x128xbf16>
    %c0_59 = arith.constant 0 : index
    %c0_60 = arith.constant 0 : index
    %117 = vector.load %arg18[%c0_59, %c0_60] : memref<16x128xbf16, #tpu.memory_space<vmem>>, vector<16x128xbf16>
    tpu.vector_store %arg18[%c0_59, %c0_60], %116 {strides = array<i32>} : memref<16x128xbf16, #tpu.memory_space<vmem>>, vector<16x128xbf16>,
    return
  }
  func.func @transform_0(%arg0: i32) -> (i32, i32) {
    %c0_i32 = arith.constant 0 : i32
    %c0_i32_0 = arith.constant 0 : i32
    return %arg0, %c0_i32 : i32, i32
  }
  func.func @transform_1(%arg0: i32) -> (i32, i32) {
    %c0_i32 = arith.constant 0 : i32
    %c0_i32_0 = arith.constant 0 : i32
    %c0_i32_1 = arith.constant 0 : i32
    return %c0_i32, %c0_i32_0 : i32, i32
  }
  func.func @transform_2(%arg0: i32) -> (i32, i32) {
    %c0_i32 = arith.constant 0 : i32
    %c0_i32_0 = arith.constant 0 : i32
    %c0_i32_1 = arith.constant 0 : i32
    return %c0_i32, %c0_i32_0 : i32, i32
  }
  func.func @transform_3(%arg0: i32) -> (i32, i32) {
    %c0_i32 = arith.constant 0 : i32
    %c0_i32_0 = arith.constant 0 : i32
    %c0_i32_1 = arith.constant 0 : i32
    return %c0_i32, %c0_i32_0 : i32, i32
  }
  func.func @transform_4(%arg0: i32) -> (i32, i32) {
    %c0_i32 = arith.constant 0 : i32
    %c0_i32_0 = arith.constant 0 : i32
    %c0_i32_1 = arith.constant 0 : i32
    return %c0_i32, %c0_i32_0 : i32, i32
  }
  func.func @transform_5(%arg0: i32) -> (i32, i32) {
    %c0_i32 = arith.constant 0 : i32
    %c0_i32_0 = arith.constant 0 : i32
    %c0_i32_1 = arith.constant 0 : i32
    return %c0_i32, %c0_i32_0 : i32, i32
  }
  func.func @transform_6(%arg0: i32) -> (i32, i32) {
    %c0_i32 = arith.constant 0 : i32
    %c0_i32_0 = arith.constant 0 : i32
    %c0_i32_1 = arith.constant 0 : i32
    return %c0_i32, %c0_i32_0 : i32, i32
  }
  func.func @transform_7(%arg0: i32) -> (i32, i32) {
    %c0_i32 = arith.constant 0 : i32
    %c0_i32_0 = arith.constant 0 : i32
    %c0_i32_1 = arith.constant 0 : i32
    return %c0_i32, %c0_i32_0 : i32, i32
  }
  func.func @transform_8(%arg0: i32) -> (i32, i32) {
    %c0_i32 = arith.constant 0 : i32
    %c0_i32_0 = arith.constant 0 : i32
    %c0_i32_1 = arith.constant 0 : i32
    return %c0_i32, %c0_i32_0 : i32, i32
  }
  func.func @transform_9(%arg0: i32) -> (i32, i32) {
    %c0_i32 = arith.constant 0 : i32
    %c0_i32_0 = arith.constant 0 : i32
    %c0_i32_1 = arith.constant 0 : i32
    return %c0_i32, %c0_i32_0 : i32, i32
  }
  func.func @transform_10(%arg0: i32) -> (i32, i32) {
    %c0_i32 = arith.constant 0 : i32
    %c0_i32_0 = arith.constant 0 : i32
    %c0_i32_1 = arith.constant 0 : i32
    return %c0_i32, %c0_i32_0 : i32, i32
  }
  func.func @transform_11(%arg0: i32) -> (i32, i32) {
    %c0_i32 = arith.constant 0 : i32
    %c0_i32_0 = arith.constant 0 : i32
    %c0_i32_1 = arith.constant 0 : i32
    return %c0_i32, %c0_i32_0 : i32, i32
  }
  func.func @transform_12(%arg0: i32) -> (i32, i32) {
    %c0_i32 = arith.constant 0 : i32
    %c0_i32_0 = arith.constant 0 : i32
    %c0_i32_1 = arith.constant 0 : i32
    return %c0_i32, %c0_i32_0 : i32, i32
  }
  func.func @transform_13(%arg0: i32) -> (i32, i32) {
    %c0_i32 = arith.constant 0 : i32
    %c0_i32_0 = arith.constant 0 : i32
    %c0_i32_1 = arith.constant 0 : i32
    return %c0_i32, %c0_i32_0 : i32, i32
  }
  func.func @transform_14(%arg0: i32) -> (i32, i32) {
    %c0_i32 = arith.constant 0 : i32
    %c0_i32_0 = arith.constant 0 : i32
    %c0_i32_1 = arith.constant 0 : i32
    return %c0_i32, %c0_i32_0 : i32, i32
  }
  func.func @transform_15(%arg0: i32) -> (i32, i32) {
    %c0_i32 = arith.constant 0 : i32
    %c0_i32_0 = arith.constant 0 : i32
    %c0_i32_1 = arith.constant 0 : i32
    return %c0_i32, %c0_i32_0 : i32, i32
  }
  func.func @transform_16(%arg0: i32) -> (i32, i32) {
    %c0_i32 = arith.constant 0 : i32
    %c0_i32_0 = arith.constant 0 : i32
    %c0_i32_1 = arith.constant 0 : i32
    return %c0_i32, %c0_i32_0 : i32, i32
  }
  func.func @transform_17(%arg0: i32) -> (i32, i32) {
    %c0_i32 = arith.constant 0 : i32
    %c0_i32_0 = arith.constant 0 : i32
    return %arg0, %c0_i32 : i32, i32
  }
}

</mosaic_0001>

<bundles_post_ra>
// kernel: nkat_forward.1
= control target key start
LH: loop header
LB: loop body
LE: loop exit
PB: predicated region body
PF: predicated region fallthrough
CT: control target
= control target key end

     0   :  { %v1709_v1 = vmov 0   ;;  %vm110_vm0 = vcmask 130048   ;;  %v65_v21 = vlaneseq  ;;  %vm1711_vm1 = vmmov 0   ;;  %s2274_s1 = inlined_call_operand.vmem [shape: bf16[16,512], index: 1, kind: input, shape index: {}]   ;;  %s2275_s0 = inlined_call_operand.vmem [shape: bf16[16,16], index: 0, kind: input, shape index: {}]   ;;  %s2276_s5 = inlined_call_operand.vmem [shape: bf16[512,256], index: 5, kind: input, shape index: {}]   ;;  %s2277_s2 = inlined_call_operand.vmem [shape: f32[1,512], index: 2, kind: input, shape index: {}]   ;;  %s2278_s3 = inlined_call_operand.vmem [shape: f32[1,512], index: 3, kind: input, shape index: {}]   ;;  %s2279_s4 = inlined_call_operand.vmem [shape: f32[1,512], index: 4, kind: input, shape index: {}]   ;;  %s2280_s6 = inlined_call_operand.vmem [shape: f32[1,256], index: 6, kind: input, shape index: {}]   ;;  %s2281_s9 = inlined_call_operand.vmem [shape: bf16[256,128], index: 9, kind: input, shape index: {}]   ;;  %s2282_s7 = inlined_call_operand.vmem [shape: f32[1,256], index: 7, kind: input, shape index: {}]   ;;  %s2283_s8 = inlined_call_operand.vmem [shape: f32[1,256], index: 8, kind: input, shape index: {}]   ;;  %s2284_s10 = inlined_call_operand.vmem [shape: f32[1,128], index: 10, kind: input, shape index: {}]   ;;  %s2285_s13 = inlined_call_operand.vmem [shape: bf16[128,128], index: 13, kind: input, shape index: {}]   ;;  %s2286_s15 = inlined_call_operand.vmem [shape: bf16[128,128], index: 15, kind: input, shape index: {}]   ;;  %s2287_s11 = inlined_call_operand.vmem [shape: f32[1,128], index: 11, kind: input, shape index: {}]   ;;  %s2288_s12 = inlined_call_operand.vmem [shape: f32[1,128], index: 12, kind: input, shape index: {}]   ;;  %s2289_s14 = inlined_call_operand.vmem [shape: f32[1,128], index: 14, kind: input, shape index: {}]   ;;  %s2290_s16 = inlined_call_operand.vmem [shape: f32[1,128], index: 16, kind: input, shape index: {}]   ;;  %s2291_s17 = inlined_call_operand.vmem [shape: bf16[16,128], index: 17, kind: output, shape index: {}]  }
   0x1   :  { %2293 = sst [smem:[#allocation2_spill]] %s2274_s1  ;;  %146 = vmatprep.mubr.bf16.mxu1 %v1709_v1  ;;  %v1569_v6 = vld [vmem:[%s2276_s5 + $0x4] ss:$8 sps:$4 sm:$0xff]   ;;  %v1571_v7 = vld [vmem:[%s2276_s5] ss:$8 sps:$4 sm:$0xff]  }
   0x2   :  { %2294 = sst [smem:[#allocation3_spill]] %s2275_s0  ;;  %s2295_s26 = sld [smem:[#allocation2_spill]]  ;;  %726 = vmatprep.subr.bf16.mxu0 %v1569_v6  ;;  %v1572_v8 = vld [vmem:[%s2276_s5 + $0x14] ss:$8 sps:$4 sm:$0xff]   ;;  %v1574_v9 = vld [vmem:[%s2276_s5 + $0x10] ss:$8 sps:$4 sm:$0xff]  }
   0x3   :  { %s2296_s30 = sld [smem:[#allocation3_spill]]  ;;  %727 = vmatpush1.bf16.msra.mxu0 %v1571_v7  ;;  %v1575_v10 = vld [vmem:[%s2276_s5 + $0x24] ss:$8 sps:$4 sm:$0xff]   ;;  %v1577_v11 = vld [vmem:[%s2276_s5 + $0x20] ss:$8 sps:$4 sm:$0xff]   ;;  %v66_v22 = vshrl.u32 %v65_v21, 7 }
   0x4   :  { %728 = vmatprep.subr.bf16.mxu0 %v1572_v8  ;;  %v1578_v12 = vld [vmem:[%s2276_s5 + $0x34] ss:$8 sps:$4 sm:$0xff]   ;;  %v1580_v13 = vld [vmem:[%s2276_s5 + $0x30] ss:$8 sps:$4 sm:$0xff]   ;;  %v1581_v14 = vld [vmem:[%s2276_s5 + $0x44] ss:$8 sps:$4 sm:$0xff]  }
   0x5   :  { %v1583_v15 = vld [vmem:[%s2276_s5 + $0x40] ss:$8 sps:$4 sm:$0xff]   ;;  %v1584_v16 = vld [vmem:[%s2276_s5 + $0x54] ss:$8 sps:$4 sm:$0xff]   ;;  %v1586_v17 = vld [vmem:[%s2276_s5 + $0x50] ss:$8 sps:$4 sm:$0xff]  }
   0x6   :  { %v1587_v18 = vld [vmem:[%s2276_s5 + $0x64] ss:$8 sps:$4 sm:$0xff]   ;;  %v1589_v19 = vld [vmem:[%s2276_s5 + $0x60] ss:$8 sps:$4 sm:$0xff]   ;;  %v1590_v20 = vld [vmem:[%s2276_s5 + $0x74] ss:$8 sps:$4 sm:$0xff]  }
   0x7   :  { %729 = vmatpush1.bf16.msra.mxu0 %v1574_v9  ;;  %v1862_v23 = vsub.s32 0, %v66_v22  ;;  %v1864_v24 = vsub.s32 1, %v66_v22  ;;  %v63_v25 = vld [vmem:[%s2277_s2] sm:$0xf]  ;;  %v1871_v30 = vsub.s32 2, %v66_v22  ;;  %v1873_v32 = vsub.s32 3, %v66_v22 }
   0x8   :  { %v1562_v0 = vld [vmem:[%s2295_s26 + $0x4] ss:$16 sps:$4 sm:$0xff]   ;;  %v1564_v2 = vld [vmem:[%s2295_s26] ss:$16 sps:$4 sm:$0xff]   ;;  %v1566_v4 = vld [vmem:[%s2295_s26 + $0x8] ss:$16 sps:$4 sm:$0xff]   ;;  %730 = vmatprep.subr.bf16.mxu0 %v1575_v10 }
   0x9   :  { %114 = vmatprep.subr.bf16.mxu1 %v1562_v0  ;;  %v1565_v3 = vld [vmem:[%s2296_s30] sm:$0xff]   ;;  %v1568_v5 = vld [vmem:[%s2295_s26 + $0xc] ss:$16 sps:$4 sm:$0xff]   ;;  %v68_v26 = vrot.slane %v63_v25, %v1862_v23  ;;  %v72_v27 = vrot.slane %v63_v25, %v1864_v24  ;;  %v76_v38 = vrot.slane %v63_v25, %v1871_v30  ;;  %v80_v39 = vrot.slane %v63_v25, %v1873_v32  ;;  %v1598_v8 = vld [vmem:[%s2276_s5 + $0x90] ss:$8 sps:$4 sm:$0xff]  }
   0xa   :  { %115 = vmatpush1.bf16.msra.mxu1 %v1564_v2  ;;  %v1595_v6 = vld [vmem:[%s2276_s5 + $0x80] ss:$8 sps:$4 sm:$0xff]   ;;  %v1596_v7 = vld [vmem:[%s2276_s5 + $0x94] ss:$8 sps:$4 sm:$0xff]   ;;  %v1599_v9 = vld [vmem:[%s2276_s5 + $0xa4] ss:$8 sps:$4 sm:$0xff]  }
   0xb   :  { %157 = vmatprep.subr.bf16.mxu1 %v1568_v5  ;;  %731 = vmatpush1.bf16.msra.mxu0 %v1577_v11  ;;  %v1593_v5 = vld [vmem:[%s2276_s5 + $0x84] ss:$8 sps:$4 sm:$0xff]   ;;  %v1601_v10 = vld [vmem:[%s2276_s5 + $0xa0] ss:$8 sps:$4 sm:$0xff]   ;;  %v1602_v11 = vld [vmem:[%s2276_s5 + $0xb4] ss:$8 sps:$4 sm:$0xff]  }
   0xc   :  { %732 = vmatprep.subr.bf16.mxu0 %v1578_v12  ;;  %v1604_v12 = vld [vmem:[%s2276_s5 + $0xb0] ss:$8 sps:$4 sm:$0xff]   ;;  %v1619_v21 = vld [vmem:[%s2276_s5 + $0x104] ss:$8 sps:$4 sm:$0xff]  }
   0xd   :  { %1359 = vmatmul.mubr.msk.bf16.vlgmr.msra.gmra.mrb[0].mxu1 %vm110_vm0, %v1565_v3 }
   0xe   :  { %158 = vmatpush1.bf16.msra.mxu1 %v1566_v4  ;;  %189 = vmatprep.mubr.bf16.mxu1 %v1709_v1  ;;  %v1592_v4 = vld [vmem:[%s2276_s5 + $0x70] ss:$8 sps:$4 sm:$0xff]  }
   0xf   :  { %733 = vmatpush1.bf16.msra.mxu0 %v1580_v13  ;;  %v1605_v13 = vld [vmem:[%s2276_s5 + $0xc4] ss:$8 sps:$4 sm:$0xff]  }
  0x10   :  { %734 = vmatprep.subr.bf16.mxu0 %v1581_v14  ;;  %v1607_v14 = vld [vmem:[%s2276_s5 + $0xc0] ss:$8 sps:$4 sm:$0xff]  }
  0x13   :  { %735 = vmatpush1.bf16.msra.mxu0 %v1583_v15  ;;  %v1608_v15 = vld [vmem:[%s2276_s5 + $0xd4] ss:$8 sps:$4 sm:$0xff]  }
  0x14   :  { %736 = vmatprep.subr.bf16.mxu0 %v1584_v16  ;;  %v1610_v16 = vld [vmem:[%s2276_s5 + $0xd0] ss:$8 sps:$4 sm:$0xff]  }
  0x15   :  { %1360 = vmatmul.mubr.msk.bf16.vlgmr.msra.gmra.mrb[4].mxu1 %vm110_vm0, %v1565_v3 }
  0x17   :  { %737 = vmatpush1.bf16.msra.mxu0 %v1586_v17  ;;  %v1611_v17 = vld [vmem:[%s2276_s5 + $0xe4] ss:$8 sps:$4 sm:$0xff]  }
  0x18   :  { %738 = vmatprep.subr.bf16.mxu0 %v1587_v18  ;;  %v1613_v18 = vld [vmem:[%s2276_s5 + $0xe0] ss:$8 sps:$4 sm:$0xff]  }
  0x1b   :  { %739 = vmatpush1.bf16.msra.mxu0 %v1589_v19  ;;  %v1614_v19 = vld [vmem:[%s2276_s5 + $0xf4] ss:$8 sps:$4 sm:$0xff]  }
  0x1c   :  { %740 = vmatprep.subr.bf16.mxu0 %v1590_v20  ;;  %v1616_v20 = vld [vmem:[%s2276_s5 + $0xf0] ss:$8 sps:$4 sm:$0xff]  }
  0x1f   :  { %741 = vmatpush1.bf16.msra.mxu0 %v1592_v4 }
  0x20   :  { %742 = vmatprep.subr.bf16.mxu0 %v1593_v5 }
  0x23   :  { %743 = vmatpush1.bf16.msra.mxu0 %v1595_v6 }
  0x24   :  { %744 = vmatprep.subr.bf16.mxu0 %v1596_v7 }
  0x27   :  { %745 = vmatpush1.bf16.msra.mxu0 %v1598_v8 }
  0x28   :  { %746 = vmatprep.subr.bf16.mxu0 %v1599_v9 }
  0x2b   :  { %747 = vmatpush1.bf16.msra.mxu0 %v1601_v10 }
  0x2c   :  { %748 = vmatprep.subr.bf16.mxu0 %v1602_v11 }
  0x2f   :  { %749 = vmatpush1.bf16.msra.mxu0 %v1604_v12 }
  0x30   :  { %750 = vmatprep.subr.bf16.mxu0 %v1605_v13 }
  0x33   :  { %751 = vmatpush1.bf16.msra.mxu0 %v1607_v14 }
  0x34   :  { %752 = vmatprep.subr.bf16.mxu0 %v1608_v15 }
  0x37   :  { %753 = vmatpush1.bf16.msra.mxu0 %v1610_v16 }
  0x38   :  { %754 = vmatprep.subr.bf16.mxu0 %v1611_v17 }
  0x3b   :  { %755 = vmatpush1.bf16.msra.mxu0 %v1613_v18 }
  0x3c   :  { %756 = vmatprep.subr.bf16.mxu0 %v1614_v19 }
  0x3f   :  { %757 = vmatpush1.bf16.msra.mxu0 %v1616_v20 }
  0x40   :  { %769 = vmatprep.subr.bf16.mxu0 %v1619_v21 }
  0xe0   :  { %v148_v28 = vpop.f32.mrb[0].mxu1 }
  0xe1   :  { %v150_v29 = vpop.f32.mrb[1].mxu1  ;;  %v1875_v33 = vadd.f32 %v148_v28, %v68_v26 }
  0xe2   :  { %v152_v31 = vpop.f32.mrb[2].mxu1  ;;  %v1877_v34 = vadd.f32 %v150_v29, %v72_v27 }
  0xe3   :  { %v154_v35 = vpop.f32.mrb[3].mxu1  ;;  %v1879_v36 = vadd.f32 %v152_v31, %v68_v26  ;;  %v212_v40 = vmul.f32 %v1875_v33, %v1875_v33 }
  0xe4   :  { %v1881_v37 = vadd.f32 %v154_v35, %v72_v27  ;;  %v213_v41 = vmul.f32 %v1877_v34, %v1877_v34  ;;  %v200_v47 = vadd.f32 %v1877_v34, %v1875_v33 }
  0xe5   :  { %v216_v42 = vmul.f32 %v1879_v36, %v1879_v36 }
  0xe6   :  { %v217_v43 = vmul.f32 %v1881_v37, %v1881_v37  ;;  %v205_v48 = vadd.f32 %v1881_v37, %v1879_v36  ;;  %v220_v55 = vadd.f32 %v213_v41, %v212_v40 }
  0xe8   :  { %v191_v44 = vpop.f32.mrb[4].mxu1  ;;  %v225_v58 = vadd.f32 %v217_v43, %v216_v42 }
  0xe9   :  { %v1893_v45 = vadd.f32 %v191_v44, %v76_v38  ;;  %v193_v46 = vpop.f32.mrb[5].mxu1 }
  0xea   :  { %v1899_v49 = vadd.f32 %v193_v46, %v80_v39  ;;  %v195_v50 = vpop.f32.mrb[6].mxu1 }
  0xeb   :  { %v1901_v51 = vadd.f32 %v195_v50, %v76_v38  ;;  %v197_v52 = vpop.f32.mrb[7].mxu1  ;;  %v201_v53 = vadd.f32 %v200_v47, %v1893_v45  ;;  %v214_v54 = vmul.f32 %v1893_v45, %v1893_v45  ;;  %v258_v47 = vld [vmem:[%s2278_s3] sm:$0xf] }
  0xec   :  { %v1906_v56 = vadd.f32 %v197_v52, %v80_v39  ;;  %v215_v57 = vmul.f32 %v1899_v49, %v1899_v49  ;;  %v263_v50 = vrot.slane %v258_v47, %v1862_v23  ;;  %v271_v52 = vrot.slane %v258_v47, %v1871_v30 }
  0xed   :  { %v218_v59 = vmul.f32 %v1901_v51, %v1901_v51  ;;  %v202_v60 = vadd.f32 %v201_v53, %v1899_v49  ;;  %v221_v61 = vadd.f32 %v220_v55, %v214_v54  ;;  %v206_v62 = vadd.f32 %v205_v48, %v1901_v51  ;;  %v288_v55 = vld [vmem:[%s2279_s4] sm:$0xf] }
  0xee   :  { %v219_v0 = vmul.f32 %v1906_v56, %v1906_v56  ;;  %v267_v48 = vrot.slane %v258_v47, %v1864_v24 }
  0xef   :  { %203 = vadd.xlane.f32.xlu0 %v202_v60  ;;  %v222_v63 = vadd.f32 %v221_v61, %v215_v57  ;;  %v226_v1 = vadd.f32 %v225_v58, %v218_v59  ;;  %v207_v2 = vadd.f32 %v206_v62, %v1906_v56  ;;  %v275_v60 = vrot.slane %v258_v47, %v1873_v32  ;;  %v1626_v47 = vld [vmem:[%s2276_s5 + $0x130] ss:$8 sps:$4 sm:$0xff]  }
  0xf1   :  { %223 = vadd.xlane.f32.xlu1 %v222_v63  ;;  %v227_v3 = vadd.f32 %v226_v1, %v219_v0 }
  0xf3   :  { %208 = vadd.xlane.f32.xlu0 %v207_v2  ;;  %v301_v2 = vrot.slane %v288_v55, %v1871_v30 }
  0xf5   :  { %228 = vadd.xlane.f32.xlu1 %v227_v3 }
 0x17c   :  { %v204_v22 = vpop.xlane.xlu0 %203 }
 0x17d   :  { %v210_v25 = vmul.f32 0.001953125, %v204_v22 }
 0x17e   :  { %v224_v26 = vpop.xlane.xlu1 %223 }
 0x17f   :  { %v230_v27 = vmul.f32 0.001953125, %v224_v26  ;;  %v232_v28 = vmul.f32 %v210_v25, %v210_v25  ;;  %v240_v53 = vsub.f32 %v1893_v45, %v210_v25  ;;  %v239_v54 = vsub.f32 %v1877_v34, %v210_v25 }
 0x180   :  { %v209_v29 = vpop.xlane.xlu0 %208  ;;  %v238_v57 = vsub.f32 %v1875_v33, %v210_v25  ;;  %v241_v58 = vsub.f32 %v1899_v49, %v210_v25  ;;  %v297_v45 = vrot.slane %v288_v55, %v1864_v24  ;;  %v293_v34 = vrot.slane %v288_v55, %v1862_v23 }
 0x181   :  { %v234_v31 = vsub.f32 %v230_v27, %v232_v28  ;;  %v211_v35 = vmul.f32 0.001953125, %v209_v29 }
 0x182   :  { %v229_v38 = vpop.xlane.xlu1 %228 }
 0x183   :  { %v236_v39 = vmax.f32 %v234_v31, 0.0  ;;  %v231_v40 = vmul.f32 0.001953125, %v229_v38  ;;  %v233_v41 = vmul.f32 %v211_v35, %v211_v35  ;;  %v243_v1 = vsub.f32 %v1881_v37, %v211_v35  ;;  %v1617_v31 = vld [vmem:[%s2276_s5 + $0x100] ss:$8 sps:$4 sm:$0xff]  }
 0x184   :  { %v242_v33 = vsub.f32 %v1879_v36, %v211_v35  ;;  %v244_v6 = vsub.f32 %v1901_v51, %v211_v35  ;;  %v245_v7 = vsub.f32 %v1906_v56, %v211_v35  ;;  %v305_v37 = vrot.slane %v288_v55, %v1873_v32  ;;  %v1635_v55 = vld [vmem:[%s2276_s5 + $0x160] ss:$8 sps:$4 sm:$0xff]  }
 0x185   :  { %v246_v42 = vadd.f32 1e-05, %v236_v39  ;;  %v235_v43 = vsub.f32 %v231_v40, %v233_v41  ;;  %v1622_v39 = vld [vmem:[%s2276_s5 + $0x114] ss:$8 sps:$4 sm:$0xff]  }
 0x187   :  { %1697 = vrsqrt.f32 %v246_v42  ;;  %v237_v44 = vmax.f32 %v235_v43, 0.0  ;;  %v1620_v42 = vld [vmem:[%s2276_s5 + $0x110] ss:$8 sps:$4 sm:$0xff]   ;;  %v1625_v43 = vld [vmem:[%s2276_s5 + $0x124] ss:$8 sps:$4 sm:$0xff]  }
 0x189   :  { %v247_v46 = vadd.f32 1e-05, %v237_v44  ;;  %v1623_v44 = vld [vmem:[%s2276_s5 + $0x120] ss:$8 sps:$4 sm:$0xff]  }
 0x18b   :  { %1699 = vrsqrt.f32 %v247_v46  ;;  %v1628_v46 = vld [vmem:[%s2276_s5 + $0x134] ss:$8 sps:$4 sm:$0xff]  }
 0x191   :  { %v1698_v59 = vpop.eup %1697 }
 0x192   :  { %v251_v61 = vmul.f32 %v1698_v59, %v239_v54  ;;  %v250_v62 = vmul.f32 %v1698_v59, %v238_v57  ;;  %v253_v63 = vmul.f32 %v1698_v59, %v241_v58  ;;  %v252_v0 = vmul.f32 %v1698_v59, %v240_v53  ;;  %v1632_v53 = vld [vmem:[%s2276_s5 + $0x150] ss:$8 sps:$4 sm:$0xff]   ;;  %v1637_v54 = vld [vmem:[%s2276_s5 + $0x164] ss:$8 sps:$4 sm:$0xff]   ;;  %v1640_v57 = vld [vmem:[%s2276_s5 + $0x174] ss:$8 sps:$4 sm:$0xff]  }
 0x193   :  { %v1638_v58 = vld [vmem:[%s2276_s5 + $0x170] ss:$8 sps:$4 sm:$0xff]   ;;  %v1643_v59 = vld [vmem:[%s2276_s5 + $0x184] ss:$8 sps:$4 sm:$0xff]  }
 0x194   :  { %v281_v3 = vmul.f32 %v267_v48, %v251_v61  ;;  %v280_v4 = vmul.f32 %v263_v50, %v250_v62  ;;  %v282_v49 = vmul.f32 %v271_v52, %v252_v0  ;;  %v283_v10 = vmul.f32 %v275_v60, %v253_v63  ;;  %v1646_v61 = vld [vmem:[%s2276_s5 + $0x194] ss:$8 sps:$4 sm:$0xff]   ;;  %v1644_v62 = vld [vmem:[%s2276_s5 + $0x190] ss:$8 sps:$4 sm:$0xff]   ;;  %v1649_v63 = vld [vmem:[%s2276_s5 + $0x1a4] ss:$8 sps:$4 sm:$0xff]  }
 0x195   :  { %v1700_v5 = vpop.eup %1699  ;;  %v1647_v0 = vld [vmem:[%s2276_s5 + $0x1a0] ss:$8 sps:$4 sm:$0xff]  }
 0x196   :  { %v255_v8 = vmul.f32 %v1700_v5, %v243_v1  ;;  %v254_v9 = vmul.f32 %v1700_v5, %v242_v33  ;;  %v257_v11 = vmul.f32 %v1700_v5, %v245_v7  ;;  %v256_v12 = vmul.f32 %v1700_v5, %v244_v6  ;;  %v1652_v1 = vld [vmem:[%s2276_s5 + $0x1b4] ss:$8 sps:$4 sm:$0xff]   ;;  %v1656_v33 = vld [vmem:[%s2276_s5 + $0x1d0] ss:$8 sps:$4 sm:$0xff]   ;;  %v394_v7 = vld [vmem:[%s2280_s6] sm:$0x3] }
 0x197   :  { %v312_v13 = vadd.f32 %v301_v2, %v282_v49  ;;  %v311_v30 = vadd.f32 %v297_v45, %v281_v3  ;;  %v310_v16 = vadd.f32 %v293_v34, %v280_v4  ;;  %v313_v20 = vadd.f32 %v305_v37, %v283_v10  ;;  %v1658_v3 = vld [vmem:[%s2276_s5 + $0x1d4] ss:$8 sps:$4 sm:$0xff]   ;;  %v1661_v4 = vld [vmem:[%s2276_s5 + $0x1e4] ss:$8 sps:$4 sm:$0xff]   ;;  %v1659_v49 = vld [vmem:[%s2276_s5 + $0x1e0] ss:$8 sps:$4 sm:$0xff]  }
 0x198   :  { %v285_v14 = vmul.f32 %v267_v48, %v255_v8  ;;  %v284_v15 = vmul.f32 %v263_v50, %v254_v9  ;;  %v287_v36 = vmul.f32 %v275_v60, %v257_v11  ;;  %v286_v17 = vmul.f32 %v271_v52, %v256_v12  ;;  %v1631_v48 = vld [vmem:[%s2276_s5 + $0x144] ss:$8 sps:$4 sm:$0xff]   ;;  %v1629_v50 = vld [vmem:[%s2276_s5 + $0x140] ss:$8 sps:$4 sm:$0xff]   ;;  %v1634_v52 = vld [vmem:[%s2276_s5 + $0x154] ss:$8 sps:$4 sm:$0xff]  }
 0x199   :  { %v319_v56 = vmax.f32 %v311_v30, 0.0  ;;  %v318_v25 = vmax.f32 %v310_v16, 0.0  ;;  %v320_v32 = vmax.f32 %v312_v13, 0.0  ;;  %v321_v38 = vmax.f32 %v313_v20, 0.0  ;;  %v1641_v60 = vld [vmem:[%s2276_s5 + $0x180] ss:$8 sps:$4 sm:$0xff]  }
 0x19a   :  { %v315_v18 = vadd.f32 %v297_v45, %v285_v14  ;;  %v314_v19 = vadd.f32 %v293_v34, %v284_v15  ;;  %v317_v51 = vadd.f32 %v305_v37, %v287_v36  ;;  %v316_v21 = vadd.f32 %v301_v2, %v286_v17  ;;  %v1650_v45 = vld [vmem:[%s2276_s5 + $0x1b0] ss:$8 sps:$4 sm:$0xff]   ;;  %v1655_v34 = vld [vmem:[%s2276_s5 + $0x1c4] ss:$8 sps:$4 sm:$0xff]   ;;  %v1653_v2 = vld [vmem:[%s2276_s5 + $0x1c0] ss:$8 sps:$4 sm:$0xff]  }
 0x19b   :  { %v1664_v5 = vld [vmem:[%s2276_s5 + $0x1f4] ss:$8 sps:$4 sm:$0xff]   ;;  %v1662_v6 = vld [vmem:[%s2276_s5 + $0x1f0] ss:$8 sps:$4 sm:$0xff]   ;;  %v399_v8 = vrot.slane %v394_v7, %v1862_v23  ;;  %v403_v9 = vrot.slane %v394_v7, %v1864_v24 }
 0x19c   :  { %v323_v22 = vmax.f32 %v315_v18, 0.0  ;;  %v322_v26 = vmax.f32 %v314_v19, 0.0  ;;  %v325_v27 = vmax.f32 %v317_v51, 0.0  ;;  %v324_v28 = vmax.f32 %v316_v21, 0.0 }
 0x19e   :  { %v327_v29 = vpack.c.bf16 %v323_v22, %v319_v56  ;;  %v326_v35 = vpack.c.bf16 %v322_v26, %v318_v25  ;;  %v1999_v40 = vpack.c.bf16 %v324_v28, %v320_v32  ;;  %v329_v41 = vpack.c.bf16 %v325_v27, %v321_v38  ;;  %v1665_v56 = vld [vmem:[%s2281_s9 + $0x40] sm:$0xff]   ;;  %v1667_v25 = vld [vmem:[%s2281_s9 + $0x48] sm:$0xff]   ;;  %v1669_v27 = vld [vmem:[%s2281_s9 + $0x50] sm:$0xff]  }
 0x19f   :  { %v1666_v22 = vld [vmem:[%s2281_s9] sm:$0xff]   ;;  %1471 = vmatprep.subr.bf16.mxu1 %v1665_v56  ;;  %v1668_v26 = vld [vmem:[%s2281_s9 + $0x8] sm:$0xff]   ;;  %v1670_v32 = vld [vmem:[%s2281_s9 + $0x10] sm:$0xff]  }
 0x1a0   :  { %758 = vmatprep.mubr.bf16.mxu0 %v327_v29  ;;  %1472 = vmatpush3.bf16.msra.mxu1 %v1666_v22  ;;  %v1671_v28 = vld [vmem:[%s2281_s9 + $0x58] sm:$0xff]   ;;  %v1675_v38 = vld [vmem:[%s2281_s9 + $0x68] sm:$0xff]  }
 0x1a1   :  { %759 = vmatmul.mubr.bf16.vlgmr.msra.gmra.mrb[0].mxu0 %v326_v35  ;;  %1473 = vmatprep.subr.bf16.mxu1 %v1667_v25  ;;  %v1672_v29 = vld [vmem:[%s2281_s9 + $0x18] sm:$0xff]   ;;  %v1674_v35 = vld [vmem:[%s2281_s9 + $0x20] sm:$0xff]  }
 0x1a2   :  { %770 = vmatpush1.bf16.msra.mxu0 %v1617_v31  ;;  %801 = vmatprep.mubr.bf16.mxu0 %v329_v41  ;;  %v1673_v31 = vld [vmem:[%s2281_s9 + $0x60] sm:$0xff]   ;;  %v1678_v41 = vld [vmem:[%s2281_s9 + $0x30] sm:$0xff]  }
 0x1a3   :  { %771 = vmatprep.subr.bf16.mxu0 %v1622_v39  ;;  %v1676_v39 = vld [vmem:[%s2281_s9 + $0x28] sm:$0xff]  }
 0x1a4   :  { %1474 = vmatpush3.bf16.msra.mxu1 %v1668_v26 }
 0x1a5   :  { %1475 = vmatprep.subr.bf16.mxu1 %v1669_v27 }
 0x1a6   :  { %772 = vmatpush1.bf16.msra.mxu0 %v1620_v42  ;;  %v1679_v42 = vld [vmem:[%s2281_s9 + $0x78] sm:$0xff]  }
 0x1a7   :  { %773 = vmatprep.subr.bf16.mxu0 %v1625_v43  ;;  %v1680_v43 = vld [vmem:[%s2281_s9 + $0x38] sm:$0xff]  }
 0x1a8   :  { %1476 = vmatpush3.bf16.msra.mxu1 %v1670_v32 }
 0x1a9   :  { %1477 = vmatprep.subr.bf16.mxu1 %v1671_v28 }
 0x1aa   :  { %774 = vmatpush1.bf16.msra.mxu0 %v1623_v44 }
 0x1ab   :  { %775 = vmatprep.subr.bf16.mxu0 %v1628_v46 }
 0x1ac   :  { %1478 = vmatpush3.bf16.msra.mxu1 %v1672_v29 }
 0x1ad   :  { %1479 = vmatprep.subr.bf16.mxu1 %v1673_v31 }
 0x1ae   :  { %776 = vmatpush1.bf16.msra.mxu0 %v1626_v47 }
 0x1af   :  { %777 = vmatprep.subr.bf16.mxu0 %v1631_v48 }
 0x1b0   :  { %1480 = vmatpush3.bf16.msra.mxu1 %v1674_v35  ;;  %v1681_v35 = vld [vmem:[%s2285_s13] sm:$0xff]  }
 0x1b1   :  { %1481 = vmatprep.subr.bf16.mxu1 %v1675_v38  ;;  %v1710_v38 = vmov 0.0  }
 0x1b2   :  { %778 = vmatpush1.bf16.msra.mxu0 %v1629_v50 }
 0x1b3   :  { %779 = vmatprep.subr.bf16.mxu0 %v1634_v52 }
 0x1b4   :  { %1482 = vmatpush3.bf16.msra.mxu1 %v1676_v39  ;;  %v1682_v39 = vld [vmem:[%s2285_s13 + $0x8] sm:$0xff]  }
 0x1b6   :  { %780 = vmatpush1.bf16.msra.mxu0 %v1632_v53 }
 0x1b7   :  { %781 = vmatprep.subr.bf16.mxu0 %v1637_v54 }
 0x1ba   :  { %782 = vmatpush1.bf16.msra.mxu0 %v1635_v55 }
 0x1bb   :  { %783 = vmatprep.subr.bf16.mxu0 %v1640_v57 }
 0x1be   :  { %784 = vmatpush1.bf16.msra.mxu0 %v1638_v58 }
 0x1bf   :  { %785 = vmatprep.subr.bf16.mxu0 %v1643_v59 }
 0x1c2   :  { %786 = vmatpush1.bf16.msra.mxu0 %v1641_v60 }
 0x1c3   :  { %787 = vmatprep.subr.bf16.mxu0 %v1646_v61 }
 0x1c6   :  { %788 = vmatpush1.bf16.msra.mxu0 %v1644_v62 }
 0x1c7   :  { %789 = vmatprep.subr.bf16.mxu0 %v1649_v63 }
 0x1ca   :  { %790 = vmatpush1.bf16.msra.mxu0 %v1647_v0  ;;  %v850_v0 = vld [vmem:[%s2282_s7] sm:$0x3] }
 0x1cb   :  { %791 = vmatprep.subr.bf16.mxu0 %v1652_v1  ;;  %v866_v1 = vld [vmem:[%s2283_s8] sm:$0x3] }
 0x1ce   :  { %792 = vmatpush1.bf16.msra.mxu0 %v1650_v45 }
 0x1cf   :  { %793 = vmatprep.subr.bf16.mxu0 %v1655_v34 }
 0x1d2   :  { %794 = vmatpush1.bf16.msra.mxu0 %v1653_v2  ;;  %v855_v2 = vrot.slane %v850_v0, %v1862_v23 }
 0x1d3   :  { %795 = vmatprep.subr.bf16.mxu0 %v1658_v3  ;;  %v859_v3 = vrot.slane %v850_v0, %v1864_v24 }
 0x1d6   :  { %796 = vmatpush1.bf16.msra.mxu0 %v1656_v33 }
 0x1d7   :  { %797 = vmatprep.subr.bf16.mxu0 %v1661_v4  ;;  %v871_v4 = vrot.slane %v866_v1, %v1862_v23 }
 0x1da   :  { %798 = vmatpush1.bf16.msra.mxu0 %v1659_v49  ;;  %v875_v49 = vrot.slane %v866_v1, %v1864_v24 }
 0x1db   :  { %799 = vmatprep.subr.bf16.mxu0 %v1664_v5 }
 0x1de   :  { %800 = vmatpush1.bf16.msra.mxu0 %v1662_v6 }
 0x1e1   :  { %802 = vmatmul.mubr.bf16.vlgmr.msra.gmra.mrb[0].mxu0 %v1999_v40  ;;  %v1677_v40 = vld [vmem:[%s2281_s9 + $0x70] sm:$0xff]  }
 0x1e2   :  { %1483 = vmatprep.subr.bf16.mxu1 %v1677_v40  ;;  %v1683_v40 = vld [vmem:[%s2285_s13 + $0x10] sm:$0xff]  }
 0x1e3   :  { %1484 = vmatpush3.bf16.msra.mxu1 %v1678_v41  ;;  %v1684_v41 = vld [vmem:[%s2285_s13 + $0x18] sm:$0xff]  }
 0x1e4   :  { %1485 = vmatprep.subr.bf16.mxu1 %v1679_v42  ;;  %v1685_v42 = vld [vmem:[%s2285_s13 + $0x20] sm:$0xff]  }
 0x1e7   :  { %1486 = vmatpush3.bf16.msra.mxu1 %v1680_v43  ;;  %v1686_v43 = vld [vmem:[%s2285_s13 + $0x28] sm:$0xff]  }
 0x1e8   :  { %1511 = vmatprep.subr.bf16.mxu1 %v1710_v38 }
 0x2b4   :  { %v803_v10 = vpop.f32.mrb[0].mxu0 }
 0x2b5   :  { %v2094_v37 = vadd.f32 %v803_v10, %v399_v8  ;;  %v805_v11 = vpop.f32.mrb[1].mxu0 }
 0x2b6   :  { %v2096_v12 = vadd.f32 %v805_v11, %v403_v9  ;;  %v807_v13 = vpop.f32.mrb[2].mxu0 }
 0x2b7   :  { %v2098_v14 = vadd.f32 %v807_v13, %v399_v8  ;;  %v809_v30 = vpop.f32.mrb[3].mxu0  ;;  %v820_v36 = vmul.f32 %v2094_v37, %v2094_v37 }
 0x2b8   :  { %v2100_v15 = vadd.f32 %v809_v30, %v403_v9  ;;  %v812_v16 = vadd.f32 %v2096_v12, %v2094_v37  ;;  %v821_v17 = vmul.f32 %v2096_v12, %v2096_v12 }
 0x2b9   :  { %v822_v19 = vmul.f32 %v2098_v14, %v2098_v14 }
 0x2ba   :  { %813 = vadd.xlane.f32.xlu0 %v812_v16  ;;  %v815_v18 = vadd.f32 %v2100_v15, %v2098_v14  ;;  %v823_v20 = vmul.f32 %v2100_v15, %v2100_v15  ;;  %v824_v51 = vadd.f32 %v821_v17, %v820_v36 }
 0x2bc   :  { %816 = vadd.xlane.f32.xlu1 %v815_v18  ;;  %v827_v21 = vadd.f32 %v823_v20, %v822_v19 }
 0x2be   :  { %825 = vadd.xlane.f32.xlu0 %v824_v51 }
 0x2c0   :  { %828 = vadd.xlane.f32.xlu1 %v827_v21  ;;  %v1425_v21 = vld [vmem:[%s2284_s10] ss:$0 sm:$0xff] }
 0x347   :  { %v814_v44 = vpop.xlane.xlu0 %813 }
 0x348   :  { %v818_v46 = vmul.f32 0.00390625, %v814_v44  ;;  %v1687_v44 = vld [vmem:[%s2285_s13 + $0x30] sm:$0xff]  }
 0x349   :  { %v817_v47 = vpop.xlane.xlu1 %816 }
 0x34a   :  { %v819_v48 = vmul.f32 0.00390625, %v817_v47  ;;  %v832_v52 = vmul.f32 %v818_v46, %v818_v46  ;;  %v838_v45 = vsub.f32 %v2094_v37, %v818_v46  ;;  %v839_v34 = vsub.f32 %v2096_v12, %v818_v46  ;;  %v1688_v46 = vld [vmem:[%s2285_s13 + $0x38] sm:$0xff]  }
 0x34b   :  { %v826_v50 = vpop.xlane.xlu0 %825 }
 0x34c   :  { %v830_v53 = vmul.f32 0.00390625, %v826_v50  ;;  %v833_v57 = vmul.f32 %v819_v48, %v819_v48  ;;  %v840_v5 = vsub.f32 %v2098_v14, %v819_v48  ;;  %v841_v6 = vsub.f32 %v2100_v15, %v819_v48 }
 0x34d   :  { %v829_v54 = vpop.xlane.xlu1 %828 }
 0x34e   :  { %v834_v55 = vsub.f32 %v830_v53, %v832_v52  ;;  %v831_v58 = vmul.f32 0.00390625, %v829_v54 }
 0x350   :  { %v836_v59 = vmax.f32 %v834_v55, 0.0  ;;  %v835_v60 = vsub.f32 %v831_v58, %v833_v57 }
 0x352   :  { %v842_v61 = vadd.f32 1e-05, %v836_v59  ;;  %v837_v62 = vmax.f32 %v835_v60, 0.0 }
 0x354   :  { %1701 = vrsqrt.f32 %v842_v61  ;;  %v843_v63 = vadd.f32 1e-05, %v837_v62 }
 0x356   :  { %1703 = vrsqrt.f32 %v843_v63 }
 0x35e   :  { %v1702_v33 = vpop.eup %1701 }
 0x35f   :  { %v847_v7 = vmul.f32 %v1702_v33, %v839_v34  ;;  %v846_v8 = vmul.f32 %v1702_v33, %v838_v45 }
 0x360   :  { %v1704_v9 = vpop.eup %1703 }
 0x361   :  { %v849_v10 = vmul.f32 %v1704_v9, %v841_v6  ;;  %v863_v37 = vmul.f32 %v859_v3, %v847_v7  ;;  %v848_v11 = vmul.f32 %v1704_v9, %v840_v5  ;;  %v862_v12 = vmul.f32 %v855_v2, %v846_v8 }
 0x363   :  { %v865_v13 = vmul.f32 %v859_v3, %v849_v10  ;;  %v879_v30 = vadd.f32 %v875_v49, %v863_v37  ;;  %v864_v16 = vmul.f32 %v855_v2, %v848_v11  ;;  %v878_v36 = vadd.f32 %v871_v4, %v862_v12  ;;  %v1442_v2 = vld [vmem:[%s2287_s11] ss:$0 sm:$0xff] }
 0x364   :  { %v1689_v11 = vld [vmem:[%s2286_s15] sm:$0xff]  }
 0x365   :  { %v881_v17 = vadd.f32 %v875_v49, %v865_v13  ;;  %v880_v18 = vadd.f32 %v871_v4, %v864_v16  ;;  %v883_v23 = vmax.f32 %v879_v30, 0.0  ;;  %v882_v24 = vmax.f32 %v878_v36, 0.0  ;;  %v1443_v49 = vld [vmem:[%s2288_s12] ss:$0 sm:$0xff]  ;;  %v1690_v13 = vld [vmem:[%s2286_s15 + $0x8] sm:$0xff]   ;;  %v1691_v30 = vld [vmem:[%s2286_s15 + $0x10] sm:$0xff]  }
 0x366   :  { %v1692_v16 = vld [vmem:[%s2286_s15 + $0x18] sm:$0xff]   ;;  %v1693_v36 = vld [vmem:[%s2286_s15 + $0x20] sm:$0xff]  }
 0x367   :  { %v885_v19 = vmax.f32 %v881_v17, 0.0  ;;  %v884_v20 = vmax.f32 %v880_v18, 0.0  ;;  %v1694_v17 = vld [vmem:[%s2286_s15 + $0x28] sm:$0xff]   ;;  %v1695_v18 = vld [vmem:[%s2286_s15 + $0x30] sm:$0xff]  }
 0x369   :  { %v887_v14 = vpack.c.bf16 %v885_v19, %v883_v23  ;;  %v886_v51 = vpack.c.bf16 %v884_v20, %v882_v24  ;;  %v1696_v23 = vld [vmem:[%s2286_s15 + $0x38] sm:$0xff]   ;;  %v1444_v19 = vld [vmem:[%s2289_s14] ss:$0 sm:$0xff] }
 0x36b   :  { %1055 = vmatprep.mubr.bf16.mxu1 %v887_v14 }
 0x36c   :  { %1056 = vmatmul.mubr.bf16.vlgmr.msra.gmra.mrb[8].mxu1 %v886_v51 }
 0x36d   :  { %1512 = vmatpush3.bf16.msra.mxu1 %v1681_v35  ;;  %1527 = vmatprep.mubr.msk.bf16.mxu1 %vm1711_vm1, %v1710_v38 }
 0x36e   :  { %1513 = vmatprep.subr.bf16.mxu1 %v1710_v38 }
 0x371   :  { %1514 = vmatpush3.bf16.msra.mxu1 %v1682_v39 }
 0x372   :  { %1515 = vmatprep.subr.bf16.mxu1 %v1710_v38 }
 0x375   :  { %1516 = vmatpush3.bf16.msra.mxu1 %v1683_v40 }
 0x376   :  { %1517 = vmatprep.subr.bf16.mxu1 %v1710_v38 }
 0x379   :  { %1518 = vmatpush3.bf16.msra.mxu1 %v1684_v41 }
 0x37a   :  { %1519 = vmatprep.subr.bf16.mxu1 %v1710_v38 }
 0x37d   :  { %1520 = vmatpush3.bf16.msra.mxu1 %v1685_v42 }
 0x37e   :  { %1521 = vmatprep.subr.bf16.mxu1 %v1710_v38 }
 0x381   :  { %1522 = vmatpush3.bf16.msra.mxu1 %v1686_v43 }
 0x382   :  { %1523 = vmatprep.subr.bf16.mxu1 %v1710_v38 }
 0x385   :  { %1524 = vmatpush3.bf16.msra.mxu1 %v1687_v44 }
 0x386   :  { %1525 = vmatprep.subr.bf16.mxu1 %v1710_v38 }
 0x389   :  { %1526 = vmatpush3.bf16.msra.mxu1 %v1688_v46 }
 0x38a   :  { %1531 = vmatprep.subr.bf16.mxu1 %v1710_v38 }
 0x43f   :  { %v1487_v15 = vpop.f32.mrb[8].mxu1 }
 0x440   :  { %v1488_v56 = vpop.f32.mrb[9].mxu1 }
 0x441   :  { %v1489_v22 = vadd.f32 %v1488_v56, %v1487_v15  ;;  %v1490_v25 = vpop.f32.mrb[10].mxu1 }
 0x442   :  { %v1491_v26 = vpop.f32.mrb[11].mxu1 }
 0x443   :  { %v2179_v27 = vadd.f32 %v1489_v22, %v1425_v21  ;;  %v1492_v32 = vadd.f32 %v1491_v26, %v1490_v25  ;;  %v1453_v26 = vld [vmem:[%s2290_s16] ss:$0 sm:$0xff] }
 0x445   :  { %v2181_v28 = vadd.f32 %v1492_v32, %v1425_v21  ;;  %1064 = vadd.xlane.f32.xlu0 %v2179_v27  ;;  %v1070_v29 = vmul.f32 %v2179_v27, %v2179_v27 }
 0x447   :  { %1066 = vadd.xlane.f32.xlu1 %v2181_v28  ;;  %v1071_v31 = vmul.f32 %v2181_v28, %v2181_v28 }
 0x449   :  { %1072 = vadd.xlane.f32.xlu0 %v1070_v29 }
 0x44b   :  { %1074 = vadd.xlane.f32.xlu1 %v1071_v31 }
 0x4d2   :  { %v1065_v47 = vpop.xlane.xlu0 %1064 }
 0x4d3   :  { %v1068_v48 = vmul.f32 0.0078125, %v1065_v47 }
 0x4d4   :  { %v1067_v50 = vpop.xlane.xlu1 %1066 }
 0x4d5   :  { %v1069_v52 = vmul.f32 0.0078125, %v1067_v50  ;;  %v1078_v54 = vmul.f32 %v1068_v48, %v1068_v48  ;;  %v1084_v45 = vsub.f32 %v2179_v27, %v1068_v48 }
 0x4d6   :  { %v1073_v53 = vpop.xlane.xlu0 %1072 }
 0x4d7   :  { %v1076_v55 = vmul.f32 0.0078125, %v1073_v53  ;;  %v1079_v58 = vmul.f32 %v1069_v52, %v1069_v52  ;;  %v1085_v3 = vsub.f32 %v2181_v28, %v1069_v52 }
 0x4d8   :  { %v1075_v57 = vpop.xlane.xlu1 %1074 }
 0x4d9   :  { %v1080_v59 = vsub.f32 %v1076_v55, %v1078_v54  ;;  %v1077_v60 = vmul.f32 0.0078125, %v1075_v57 }
 0x4db   :  { %v1082_v61 = vmax.f32 %v1080_v59, 0.0  ;;  %v1081_v62 = vsub.f32 %v1077_v60, %v1079_v58 }
 0x4dd   :  { %v1086_v63 = vadd.f32 1e-05, %v1082_v61  ;;  %v1083_v0 = vmax.f32 %v1081_v62, 0.0 }
 0x4df   :  { %1705 = vrsqrt.f32 %v1086_v63  ;;  %v1087_v1 = vadd.f32 1e-05, %v1083_v0 }
 0x4e1   :  { %1707 = vrsqrt.f32 %v1087_v1 }
 0x4e9   :  { %v1706_v34 = vpop.eup %1705 }
 0x4ea   :  { %v1090_v33 = vmul.f32 %v1706_v34, %v1084_v45 }
 0x4eb   :  { %v1708_v4 = vpop.eup %1707 }
 0x4ec   :  { %v1091_v5 = vmul.f32 %v1708_v4, %v1085_v3  ;;  %v1099_v6 = vmul.f32 %v1442_v2, %v1090_v33 }
 0x4ee   :  { %v1100_v7 = vmul.f32 %v1442_v2, %v1091_v5  ;;  %v1108_v8 = vadd.f32 %v1443_v49, %v1099_v6 }
 0x4f0   :  { %v1109_v9 = vadd.f32 %v1443_v49, %v1100_v7  ;;  %v1110_v10 = vmax.f32 %v1108_v8, 0.0 }
 0x4f2   :  { %v1111_v37 = vmax.f32 %v1109_v9, 0.0 }
 0x4f4   :  { %v1112_v12 = vpack.c.bf16 %v1111_v37, %v1110_v10 }
 0x4f6   :  { %1528 = vmatmul.mubr.bf16.vlgmr.msra.gmra.mrb[12].mxu1 %v1112_v12 }
 0x4f7   :  { %1532 = vmatpush3.bf16.msra.mxu1 %v1689_v11  ;;  %1547 = vmatprep.mubr.msk.bf16.mxu1 %vm1711_vm1, %v1710_v38 }
 0x4f8   :  { %1533 = vmatprep.subr.bf16.mxu1 %v1710_v38 }
 0x4fb   :  { %1534 = vmatpush3.bf16.msra.mxu1 %v1690_v13 }
 0x4fc   :  { %1535 = vmatprep.subr.bf16.mxu1 %v1710_v38 }
 0x4ff   :  { %1536 = vmatpush3.bf16.msra.mxu1 %v1691_v30 }
 0x500   :  { %1537 = vmatprep.subr.bf16.mxu1 %v1710_v38 }
 0x503   :  { %1538 = vmatpush3.bf16.msra.mxu1 %v1692_v16 }
 0x504   :  { %1539 = vmatprep.subr.bf16.mxu1 %v1710_v38 }
 0x507   :  { %1540 = vmatpush3.bf16.msra.mxu1 %v1693_v36 }
 0x508   :  { %1541 = vmatprep.subr.bf16.mxu1 %v1710_v38 }
 0x50b   :  { %1542 = vmatpush3.bf16.msra.mxu1 %v1694_v17 }
 0x50c   :  { %1543 = vmatprep.subr.bf16.mxu1 %v1710_v38 }
 0x50f   :  { %1544 = vmatpush3.bf16.msra.mxu1 %v1695_v18 }
 0x510   :  { %1545 = vmatprep.subr.bf16.mxu1 %v1710_v38 }
 0x513   :  { %1546 = vmatpush3.bf16.msra.mxu1 %v1696_v23 }
 0x5c9   :  { %v1218_v24 = vpop.f32.mrb[12].mxu1 }
 0x5ca   :  { %v1219_v20 = vadd.f32 %v1444_v19, %v1218_v24  ;;  %v1529_v14 = vpop.f32.mrb[13].mxu1 }
 0x5cb   :  { %v1221_v51 = vpop.f32.mrb[14].mxu1 }
 0x5cc   :  { %v1222_v15 = vadd.f32 %v1444_v19, %v1221_v51  ;;  %v1530_v21 = vpop.f32.mrb[15].mxu1  ;;  %v1225_v56 = vmax.f32 %v1219_v20, 0.0 }
 0x5ce   :  { %v1226_v22 = vmax.f32 %v1222_v15, 0.0 }
 0x5d0   :  { %v1227_v25 = vpack.c.bf16 %v1226_v22, %v1225_v56 }
 0x5d2   :  { %1548 = vmatmul.mubr.bf16.vlgmr.msra.gmra.mrb[16].mxu1 %v1227_v25 }
 0x6a5   :  { %v1333_v27 = vpop.f32.mrb[16].mxu1 }
 0x6a6   :  { %v1549_v32 = vpop.f32.mrb[17].mxu1  ;;  %v1334_v29 = vadd.f32 %v1453_v26, %v1333_v27 }
 0x6a7   :  { %v1336_v28 = vpop.f32.mrb[18].mxu1 }
 0x6a8   :  { %v1337_v31 = vadd.f32 %v1453_v26, %v1336_v28  ;;  %v1550_v35 = vpop.f32.mrb[19].mxu1 }
 0x6aa   :  { %v1469_v38 = vpack.c.bf16 %v1337_v31, %v1334_v29 }
 0x6ac   :  { %1470 = vst [vmem:[%s2291_s17] sm:$0xff] %v1469_v38  }

</bundles_post_ra>
